<compile_context>
chip_gen: v5e
topology: v5e:2x2
jax: 0.10.0
libtpu: 0.0.40
codegen_flags: <defaults>
</compile_context>

<pallas_src>
import jax
import jax.numpy as jnp
from jax.experimental import pallas as pl
from jax.experimental.pallas import tpu as pltpu


# ---------------------------------------------------------------------------
# Parameter construction (deterministic, mirrors module __init__ / init()).
# ---------------------------------------------------------------------------
def build_2d_sincos_posemb(h, w, embed_dim, temperature=10000.0):
    """JAX port of MultiMAE's build_2d_sincos_posemb -> (1, embed_dim, h, w)."""
    assert embed_dim % 4 == 0
    grid_w = jnp.arange(w, dtype=jnp.float32)
    grid_h = jnp.arange(h, dtype=jnp.float32)
    gw, gh = jnp.meshgrid(grid_w, grid_h, indexing="ij")  # torch.meshgrid default
    pos_dim = embed_dim // 4
    omega = jnp.arange(pos_dim, dtype=jnp.float32) / pos_dim
    omega = 1.0 / (temperature ** omega)
    out_w = jnp.einsum("m,d->md", gw.reshape(-1), omega)
    out_h = jnp.einsum("m,d->md", gh.reshape(-1), omega)
    pos_emb = jnp.concatenate(
        [jnp.sin(out_w), jnp.cos(out_w), jnp.sin(out_h), jnp.cos(out_h)], axis=1
    )[None]  # (1, h*w, embed_dim)
    # rearrange 'b (h w) d -> b d h w'
    pos_emb = pos_emb.reshape(1, h, w, embed_dim).transpose(0, 3, 1, 2)
    return pos_emb


def trunc_normal(key, shape, std=0.02, dtype=jnp.float32):
    return std * jax.random.truncated_normal(key, -2.0, 2.0, shape, dtype)


def _round_up(x, m):
    return (x + m - 1) // m * m


# ---------------------------------------------------------------------------
# Pallas kernel: fused patch-projection matmul + (pos-emb + bias) add.
# ---------------------------------------------------------------------------
def _semseg_adapter_kernel(p_ref, w_ref, pos_ref, o_ref):
    # p_ref  : (tm, K)   bf16  patch features (class-embedding values, patch-flattened)
    # w_ref  : (K, Dp)   bf16  projection weight (conv as matmul), lane-padded
    # pos_ref: (tm, Dp)  f32   positional embedding + conv bias (per token, batch-free)
    # o_ref  : (tm, Dp)  f32   output tokens
    acc = jnp.dot(p_ref[...], w_ref[...], preferred_element_type=jnp.float32)
    o_ref[...] = (acc + pos_ref[...]).astype(o_ref.dtype)


def semseg_input_adapter(x, class_emb_w, conv_w, conv_b, pos_emb, P_H, P_W, tm_max=256):
    """Forward pass of SemSegInputAdapter.

    x            : (B, H, W) int32 class indices
    class_emb_w  : (num_classes, C)
    conv_w       : (D, C, P_H, P_W)   (PyTorch Conv2d layout)
    conv_b       : (D,)
    pos_emb      : (1, D, h_posemb, w_posemb)
    returns      : (B, N_H*N_W, D) float32
    """
    B, H, W = x.shape
    assert H % P_H == 0 and W % P_W == 0
    N_H, N_W = H // P_H, W // P_W
    D, C = conv_w.shape[0], conv_w.shape[1]
    P = P_H * P_W
    K = P * C
    T = N_H * N_W  # tokens per batch element

    # Token tile: as large as possible (cap tm_max), multiple of 8, dividing the
    # padded per-batch token count so pos can be streamed without a batch broadcast.
    tm = min(tm_max, _round_up(T, 8))
    T_pad = _round_up(T, tm)
    D_pad = _round_up(D, 128)  # lane-dense output -> unmasked full-lane vst

    # --- glue: class-embedding gather directly in patch layout (bf16) -------
    # The 6-D transpose acts on the small int32 index map, not on the C-expanded
    # embedding tensor; gather output is already (token, K) contiguous.
    idx = x.reshape(B, N_H, P_H, N_W, P_W).transpose(0, 1, 3, 2, 4).reshape(B, T, P)
    patches = jnp.take(class_emb_w.astype(jnp.bfloat16), idx, axis=0)  # (B, T, P, C)
    patches = patches.reshape(B, T, K)
    if T_pad != T:
        patches = jnp.pad(patches, ((0, 0), (0, T_pad - T), (0, 0)))

    # conv weight (D, C, P_H, P_W) -> (P_H, P_W, C, D) -> (K, D) -> lane-pad -> bf16
    w_mat = conv_w.transpose(2, 3, 1, 0).reshape(K, D)
    if D_pad != D:
        w_mat = jnp.pad(w_mat, ((0, 0), (0, D_pad - D)))
    w_mat = w_mat.astype(jnp.bfloat16)

    # pos-emb bilinear resize (matches F.interpolate align_corners=False); conv bias
    # folded in; batch-independent (T_pad, D_pad) table.
    pos = jax.image.resize(pos_emb, (1, D, N_H, N_W), method="bilinear", antialias=False)
    pos = pos.transpose(0, 2, 3, 1).reshape(T, D).astype(jnp.float32)
    pos = pos + conv_b.reshape(1, D).astype(jnp.float32)
    pos = jnp.pad(pos, ((0, T_pad - T), (0, D_pad - D)))

    # VMEM budget: double-buffered tiles + the resident (double-buffered) weight.
    # Note: on v7x the constant-index weight could be single-buffered to reclaim VMEM.
    need = 2 * (tm * K * 2 + K * D_pad * 2 + tm * D_pad * 4 + tm * D_pad * 4)
    vmem_limit = int(min(64 * 2**20, max(2 * need, 16 * 2**20)))

    out = pl.pallas_call(
        _semseg_adapter_kernel,
        out_shape=jax.ShapeDtypeStruct((B, T_pad, D_pad), jnp.float32),
        grid_spec=pltpu.PrefetchScalarGridSpec(
            num_scalar_prefetch=0,
            grid=(B, T_pad // tm),
            in_specs=[
                pl.BlockSpec((None, tm, K), lambda b, t: (b, t, 0)),   # patches tile
                pl.BlockSpec((K, D_pad), lambda b, t: (0, 0)),         # full weight
                pl.BlockSpec((tm, D_pad), lambda b, t: (t, 0)),        # pos+bias tile (no batch axis)
            ],
            out_specs=pl.BlockSpec((None, tm, D_pad), lambda b, t: (b, t, 0)),
        ),
        compiler_params=pltpu.CompilerParams(
            dimension_semantics=("parallel", "parallel"),
            vmem_limit_bytes=vmem_limit,
        ),
    )(patches, w_mat, pos)

    # Strip token/lane padding (free slice in the wrapper).
    return out[:, :T, :D]


# ---------------------------------------------------------------------------
# Pure-JAX reference (lax conv on NCHW, mirroring the PyTorch code path).
# ---------------------------------------------------------------------------
def semseg_input_adapter_ref(x, class_emb_w, conv_w, conv_b, pos_emb, P_H, P_W):
    B, H, W = x.shape
    N_H, N_W = H // P_H, W // P_W
    D = conv_w.shape[0]
    emb = jnp.take(class_emb_w, x, axis=0)                    # (B, H, W, C)
    emb_nchw = emb.transpose(0, 3, 1, 2)                      # b c h w
    y = jax.lax.conv_general_dilated(
        emb_nchw.astype(jnp.float32), conv_w.astype(jnp.float32),
        window_strides=(P_H, P_W), padding="VALID",
        dimension_numbers=("NCHW", "OIHW", "NCHW"),
    ) + conv_b.reshape(1, D, 1, 1)                            # (B, D, N_H, N_W)
    x_patch = y.transpose(0, 2, 3, 1).reshape(B, N_H * N_W, D)
    pos = jax.image.resize(pos_emb, (1, D, N_H, N_W), method="bilinear", antialias=False)
    pos = pos.transpose(0, 2, 3, 1).reshape(1, N_H * N_W, D)
    return x_patch + pos


# ---------------------------------------------------------------------------
if __name__ == "__main__":
    # Module hyper-parameters (small, consistent with the forward pass)
    num_classes = 10
    stride_level = 4
    patch_size_full = 16          # -> P_H = P_W = 16 // 4 = 4
    dim_tokens = 32
    dim_class_emb = 8
    image_size = 64               # -> h_posemb = w_posemb = 64 // (4*4) = 4

    P_H = max(1, patch_size_full // stride_level)
    P_W = max(1, patch_size_full // stride_level)
    h_posemb = image_size // (stride_level * P_H)
    w_posemb = image_size // (stride_level * P_W)

    key = jax.random.PRNGKey(0)
    k_x, k_emb, k_w, k_b = jax.random.split(key, 4)

    # Input: (B, H, W) semantic class map
    B, H, W = 2, 16, 16
    x = jax.random.randint(k_x, (B, H, W), 0, num_classes, dtype=jnp.int32)

    # Parameters (deterministic synthetic init mirroring trunc_normal_(std=0.02))
    class_emb_w = trunc_normal(k_emb, (num_classes, dim_class_emb))
    conv_w = trunc_normal(k_w, (dim_tokens, dim_class_emb, P_H, P_W))
    conv_b = 0.01 * trunc_normal(k_b, (dim_tokens,))
    pos_emb = build_2d_sincos_posemb(h_posemb, w_posemb, dim_tokens)  # (1, D, h, w)

    out = semseg_input_adapter(x, class_emb_w, conv_w, conv_b, pos_emb, P_H, P_W)
    out = jax.block_until_ready(out)

    ref = semseg_input_adapter_ref(x, class_emb_w, conv_w, conv_b, pos_emb, P_H, P_W)
    assert out.shape == (B, (H // P_H) * (W // P_W), dim_tokens), out.shape
    # bf16 matmul inputs with f32 accumulation -> loosen tolerance vs f32 reference.
    assert jnp.allclose(out, ref, atol=1e-2, rtol=1e-2), float(jnp.abs(out - ref).max())

    print("KERNEL_OK")
</pallas_src>

<mosaic_0001>
module attributes {stable_mosaic.version = 11 : i64} {
  func.func @_semseg_adapter_kernel(%arg0: i32, %arg1: i32, %arg2: memref<1x16x128xbf16, #tpu.memory_space<vmem>>, %arg3: memref<128x128xbf16, #tpu.memory_space<vmem>>, %arg4: memref<16x128xf32, #tpu.memory_space<vmem>>, %arg5: memref<1x16x128xf32, #tpu.memory_space<vmem>>) attributes {dimension_semantics = [#tpu.dimension_semantics<parallel>, #tpu.dimension_semantics<parallel>], iteration_bounds = array<i64: 2, 1>, scalar_prefetch = 0 : i64, scratch_operands = 0 : i64, tpu.core_type = #tpu.core_type<tc>, window_params = [{transform_indices = @transform_0, window_bounds = array<i64: 1, 16, 128>}, {pipeline_mode = #tpu.pipeline_mode<synchronous>, transform_indices = @transform_1, window_bounds = array<i64: 128, 128>}, {transform_indices = @transform_2, window_bounds = array<i64: 16, 128>}, {transform_indices = @transform_3, window_bounds = array<i64: 1, 16, 128>}]} {
    %c0 = arith.constant 0 : index
    %c0_0 = arith.constant 0 : index
    %c0_1 = arith.constant 0 : index
    %0 = vector.load %arg2[%c0, %c0_0, %c0_1] : memref<1x16x128xbf16, #tpu.memory_space<vmem>>, vector<1x16x128xbf16>
    %1 = vector.shape_cast %0 : vector<1x16x128xbf16> to vector<16x128xbf16>
    %c0_2 = arith.constant 0 : index
    %c0_3 = arith.constant 0 : index
    %2 = vector.load %arg3[%c0_2, %c0_3] : memref<128x128xbf16, #tpu.memory_space<vmem>>, vector<128x128xbf16>
    %cst = arith.constant dense<0.000000e+00> : vector<16x128xf32>
    %3 = tpu.matmul %1, %2, %cst {dimension_numbers = #tpu.dot_dimension_numbers<[1], [0], [0], [1], [0, 0, 1, 1], [], []>} : vector<16x128xbf16>, vector<128x128xbf16>, vector<16x128xf32> -> vector<16x128xf32>
    %c0_4 = arith.constant 0 : index
    %c0_5 = arith.constant 0 : index
    %4 = vector.load %arg4[%c0_4, %c0_5] : memref<16x128xf32, #tpu.memory_space<vmem>>, vector<16x128xf32>
    %5 = arith.addf %3, %4 : vector<16x128xf32>
    %c0_6 = arith.constant 0 : index
    %c0_7 = arith.constant 0 : index
    %c0_8 = arith.constant 0 : index
    %6 = vector.load %arg5[%c0_6, %c0_7, %c0_8] : memref<1x16x128xf32, #tpu.memory_space<vmem>>, vector<1x16x128xf32>
    %7 = vector.shape_cast %6 : vector<1x16x128xf32> to vector<16x128xf32>
    %8 = vector.shape_cast %5 : vector<16x128xf32> to vector<1x16x128xf32>
    tpu.vector_store %arg5[%c0_6, %c0_7, %c0_8], %8 {strides = array<i32>} : memref<1x16x128xf32, #tpu.memory_space<vmem>>, vector<1x16x128xf32>,
    return
  }
  func.func @transform_0(%arg0: i32, %arg1: i32) -> (i32, i32, i32) {
    %c0_i32 = arith.constant 0 : i32
    %c0_i32_0 = arith.constant 0 : i32
    return %arg0, %arg1, %c0_i32 : i32, i32, i32
  }
  func.func @transform_1(%arg0: i32, %arg1: i32) -> (i32, i32) {
    %c0_i32 = arith.constant 0 : i32
    %c0_i32_0 = arith.constant 0 : i32
    %c0_i32_1 = arith.constant 0 : i32
    return %c0_i32, %c0_i32_0 : i32, i32
  }
  func.func @transform_2(%arg0: i32, %arg1: i32) -> (i32, i32) {
    %c0_i32 = arith.constant 0 : i32
    %c0_i32_0 = arith.constant 0 : i32
    return %arg1, %c0_i32 : i32, i32
  }
  func.func @transform_3(%arg0: i32, %arg1: i32) -> (i32, i32, i32) {
    %c0_i32 = arith.constant 0 : i32
    %c0_i32_0 = arith.constant 0 : i32
    return %arg0, %arg1, %c0_i32 : i32, i32, i32
  }
}

</mosaic_0001>

<bundles_post_ra>
// kernel: tpu_custom_call.1
= control target key start
LH: loop header
LB: loop body
LE: loop exit
PB: predicated region body
PF: predicated region fallthrough
CT: control target
= control target key end

     0   :  { %8 = vsyncpa [#allocation3], 0  ;;  %s983_s0 = inlined_call_operand.hbm [shape: bf16[2,16,128], index: 0, kind: input, shape index: {}]   ;;  %s984_s1 = inlined_call_operand.hbm [shape: bf16[128,128], index: 1, kind: input, shape index: {}]   ;;  %s985_s2 = inlined_call_operand.hbm [shape: f32[16,128], index: 2, kind: input, shape index: {}]   ;;  %s986_s3 = inlined_call_operand.hbm [shape: f32[2,16,128], index: 3, kind: output, shape index: {}]  }
   0x1   :  { %10 = vsyncpa [#allocation3 + $0x1], 0 }
   0x2   :  { %11 = vsyncpa [#allocation6], 0 }
   0x3   :  { %12 = vsyncpa [#allocation4], 0 }
   0x4   :  { %14 = vsyncpa [#allocation4 + $0x1], 0  ;;  %s830_s12 = smov 0   ;;  %s832_s13 = smov 0  }
   0x5   :  { %s834_s14 = smov 0   ;;  %s836_s15 = smov 0  }
   0x6   :  { %s838_s16 = smov 0   ;;  %s840_s17 = smov 0  }
   0x7 LB: > { %s469_s18 = sadd.s32 4294967295, %s800_s17   ;;  %s470_s19 = sadd.s32 4294967294, %s800_s17   ;;  %s800_s17 = sphi %s840_s17, %s20_s17   ;;  %s796_s16 = sphi %s838_s16, %s996_s16   ;;  %s792_s15 = sphi %s836_s15, %s995_s15   ;;  %s788_s14 = sphi %s834_s14, %s994_s14   ;;  %s784_s13 = sphi %s832_s13, %s993_s13   ;;  %s780_s12 = sphi %s830_s12, %s992_s12  }
   0x8   : > { %p54_p0 = scmp.ne.s32.totalorder %s784_s13, %s780_s12  ;;  %p866_p1 = scmp.eq.s32.totalorder %s469_s18, 0 }
   0x9   : > { %p133_p2 = scmp.eq.s32.totalorder %s470_s19, 1  ;;  %p471_p4 = scmp.ge.s32.totalorder %s800_s17, 1 }
   0xa   : > { %p872_p3 = por %p866_p1, %p54_p0  ;;  %p140_p6 = scmp.lt.s32.totalorder %s800_s17, 3 }
   0xb   : > { %p877_p5 = por %p133_p2, %p54_p0  ;;  %s151_s25 = sshll.u32 %s984_s1, 4  ;;  %s152_s25 = int_to_ptr.hbm [resolvable:$true] %s151_s25 }
   0xc   : > { %p885_p7 = pnand %p471_p4, %p140_p6  ;;  %s802_s27 = smov [#allocation5]  }
   0xd   : > { %s153_s28 = sshll.u32 %s802_s27, 4  ;;  %p474_p10 = scmp.ge.s32.totalorder %s800_s17, 2  ;;  %s154_s28 = int_to_ptr.vmem [resolvable:$true] %s153_s28 }
   0xe   : > { %p547_p8 = pneg %p885_p7  ;;  %s168_s4 = sshll.u32 %s985_s2, 4  ;;  %s169_s4 = int_to_ptr.hbm [resolvable:$true] %s168_s4 }
   0xf   : > { %s803_s5 = smov 64   ;;  %s804_s6 = smov 4  }
  0x10   : > { %p548_p9 = pnand %p547_p8, %p866_p1  ;;  %s805_s7 = smov [#allocation7]  }
  0x11   : > { %s170_s8 = sshll.u32 %s805_s7, 4  ;;  %s806_s9 = smov 128   ;;  %s171_s8 = int_to_ptr.vmem [resolvable:$true] %s170_s8 }
  0x12   : > { %550 = dma.hbm_to_vmem [thread:$0]  (!%p548_p9), %s152_s25, 1024, %s154_s28, [#allocation6], %s803_s5, %s803_s5, %s804_s6  }
  0x13   : > { %s807_s10 = smov 8   ;;  %p127_p11 = scmp.eq.s32.totalorder %s469_s18, 1 }
  0x14   : > { %553 = dma.hbm_to_vmem [thread:$0]  (!%p548_p9), %s169_s4, 256, %s171_s8, [#allocation6], %s806_s9, %s806_s9, %s807_s10  }
  0x15   : > { %s32_s11 = sadd.s32 1, %s796_s16  ;;  %s41_s19 = sadd.s32 1, %s788_s14 }
  0x16   : > { %p34_p12 = scmp.ge.s32.totalorder %s32_s11, 2  ;;  %p48_p13 = scmp.ne.s32.totalorder %s788_s14, %s784_s13 }
  0x17   : > { %p49_p0 = scmp.eq.s32.totalorder %s800_s17, 0  ;;  %p564_p4 = scmp.lt.s32.totalorder %s800_s17, 2 }
  0x18   : > { %s998_s11 = smov (%p34_p12, %s32_s11), 0  ;;  %p909_p2 = por %p127_p11, %p48_p13 }
  0x19   : > { %s36_s24 = ssub.s32 %s796_s16, %s998_s11  ;;  %s184_s25 = sand.u32 1, %s788_s14  }
  0x1a   : > { %p39_p6 = scmp.eq.s32.totalorder %s36_s24, 0  ;;  %p50_p8 = por %p49_p0, %p48_p13 }
  0x1b   : > { %s475_s27 = sshll.u32 %s184_s25, 3  ;;  %s524_s18 = sshll.u32 %s796_s16, 3 }
  0x1c   : > { %s919_s28 = scalar_select %p39_p6, %s788_s14, %s41_s19  }
  0x1d   : > { %s195_s4 = scalar_lea.hbm %s983_s0, %s524_s18  ;;  %s188_s8 = scalar_lea.vmem [#allocation2], %s475_s27 }
  0x1e   : > { %s196_s7 = sshll.u32 %s195_s4, 4  ;;  %s198_s9 = sshll.u32 %s188_s8, 4  ;;  %s197_s7 = int_to_ptr.hbm [resolvable:$true] %s196_s7  ;;  %s199_s9 = int_to_ptr.vmem [resolvable:$true] %s198_s9 }
  0x1f   : > { %p555_p9 = pnand %p564_p4, %p50_p8  ;;  %s185_s10 = scalar_lea.sflag [#allocation3], %s184_s25 }
  0x20   : > { %210 = sbr.rel (%p885_p7) target bundleno = 212 (0xd4), region = 32  ;;  %s932_s19 = sand.u32 (!%p885_p7), 1, %s784_s13  }
  0x21   : > { %557 = dma.hbm_to_vmem [thread:$0]  (!%p555_p9), %s197_s7, 128, %s199_s9, %s185_s10, %s803_s5, %s803_s5, %s804_s6  }
  0x22   : > { %s479_s24 = sshll.u32 (!%p885_p7), %s932_s19, 3  ;;  %s213_s27 = scalar_lea.sflag (!%p885_p7), [#allocation3], %s932_s19 }
  0x23   : > { %s216_s18 = scalar_lea.vmem (!%p885_p7), [#allocation2], %s479_s24 }
  0x25   : > { %767 = dma.done.wait (%p872_p3), %s213_s27, 128  }
  0x26   : > { %769 = vsyncadd (%p872_p3), %s213_s27, 4294967168 }
  0x27   : > { %771 = dma.done.wait (%p866_p1), [#allocation6], 1280  }
  0x28   : > { %773 = vsyncadd (%p866_p1), [#allocation6], 4294966016  ;;  %v533_v0 = vld [vmem:[#allocation5 + $0x38] sm:$0xff]  ;;  %v532_v1 = vld [vmem:[#allocation5 + $0x30] sm:$0xff]  ;;  %s482_s20 = sshll.u32 %s932_s19, 4  ;;  %s534_s21 = sshll.u32 %s792_s15, 4 }
  0x29   : > { %327 = vmatpush.bf16.msra.mxu0 %v533_v0  ;;  %v531_v2 = vld [vmem:[#allocation5 + $0x28] sm:$0xff]  ;;  %v530_v3 = vld [vmem:[#allocation5 + $0x20] sm:$0xff]  ;;  %v529_v4 = vld [vmem:[#allocation5 + $0x18] sm:$0xff]  ;;  %s357_s6 = scalar_lea.hbm %s986_s3, %s534_s21  ;;  %s249_s25 = scalar_lea.vmem [#allocation8], %s482_s20 }
  0x2a   : > { %v528_v5 = vld [vmem:[#allocation5 + $0x10] sm:$0xff]  ;;  %v527_v6 = vld [vmem:[#allocation5 + $0x8] sm:$0xff]  ;;  %v526_v7 = vld [vmem:[#allocation5] sm:$0xff]  ;;  %s358_s29 = sshll.u32 %s249_s25, 4  ;;  %s360_s30 = sshll.u32 %s357_s6, 4  ;;  %s359_s29 = int_to_ptr.vmem [resolvable:$true] %s358_s29  ;;  %s361_s30 = int_to_ptr.hbm [resolvable:$true] %s360_s30 }
  0x2b   : > { %v525_v8 = vld [vmem:[%s216_s18] sm:$0xff]  ;;  %v271_v9 = vld [vmem:[#allocation7] sm:$0xff]  ;;  %v272_v12 = vld [vmem:[#allocation7 + $0x8] sm:$0xff]  ;;  %s344_s4 = scalar_lea.sflag [#allocation4], %s932_s19  ;;  %s728_s7 = sshra.s32 %s361_s30, 4  ;;  %s729_s7 = int_to_ptr.hbm [resolvable:$true] %s728_s7 }
  0x2c   : > { %s730_s15 = scalar_lea.hbm %s729_s7, 16  ;;  %s734_s10 = scalar_lea.hbm %s986_s3, 32 }
  0x2d   : > { %328 = vmatpush.bf16.msra.mxu0 %v532_v1  ;;  %p731_p1 = scmp.ne.s32.totalorder %s729_s7, %s730_s15  ;;  %p735_p11 = scmp.lt.s32.totalorder %s729_s7, %s986_s3 }
  0x2e   : > { %p736_p12 = scmp.lt.s32.totalorder %s734_s10, %s730_s15 }
  0x2f   : > { %p732_p3 = pnand %p731_p1, %p909_p2 }
  0x30   : > { %p737_p13 = por %p736_p12, %p735_p11 }
  0x31   : > { %329 = vmatpush.bf16.msra.mxu0 %v531_v2  ;;  %p733_p7 = pneg %p732_p3 }
  0x33   : > { %p738_p0 = pnand %p737_p13, %p733_p7 }
  0x35   : > { %330 = vmatpush.bf16.msra.mxu0 %v530_v3 }
  0x39   : > { %331 = vmatpush.bf16.msra.mxu0 %v529_v4 }
  0x3d   : > { %332 = vmatpush.bf16.msra.mxu0 %v528_v5 }
  0x41   : > { %333 = vmatpush.bf16.msra.mxu0 %v527_v6 }
  0x45   : > { %334 = vmatpush.bf16.msra.mxu0 %v526_v7 }
  0x48   : > { %335 = vmatmul.bf16.vlgmr.msra.gmra.mxu0 %v525_v8 }
  0xc5   : > { %v336_v10 = vpop.f32.mrf.mxu0 }
  0xc6   : > { %v337_v11 = vadd.f32 %v336_v10, %v271_v9 }
  0xc8   : > { %341 = vst [vmem:[%s249_s25] sm:$0xff] %v337_v11 }
  0xcd   : > { %v338_v13 = vpop.f32.mrf.mxu0 }
  0xce   : > { %v339_v14 = vadd.f32 %v338_v13, %v272_v12 }
  0xd0   : > { %342 = vst [vmem:[%s249_s25 + $0x8] sm:$0xff] %v339_v14 }
  0xd1   : > { %741 = shalt.err (!%p738_p0)
}
  0xd2   : > { %s808_s19 = smov 128   ;;  %s809_s18 = smov 8  }
  0xd3   : > { %545 = dma.vmem_to_hbm [thread:$0]  (%p909_p2), %s359_s29, 256, %s361_s30, %s344_s4, %s808_s19, %s808_s19, %s809_s18  }
  0xd4 PF: > { %s375_s20 = sand.u32 1, %s780_s12   ;;  %p559_p4 = pnand %p474_p10, %p877_p5 }
  0xd5   : > { %s376_s21 = scalar_lea.sflag [#allocation4], %s375_s20 }
  0xd6   : > { %p560_p6 = pneg %p559_p4 }
  0xd8   : > { %775 = dma.done.wait (%p560_p6), %s376_s21, 256  }
  0xd9   : > { %777 = vsyncadd (%p560_p6), %s376_s21, 4294967040  ;;  %s20_s17 = sadd.s32 1, %s800_s17   ;;  %s992_s12 = smov %s784_s13 }
  0xda   : > { %p17_p8 = scmp.ge.s32.totalorder %s20_s17, 4   ;;  %s993_s13 = smov %s788_s14 }
  0xdb   : > { %s994_s14 = smov %s919_s28  ;;  %s995_s15 = smov %s796_s16 }
  0xdc   : > { %s996_s16 = smov %s998_s11  ;;  %19 = sbr.rel (!%p17_p8) target bundleno = 7 (0x7), region = 86 }
  0xe1   :  { %382 = vsyncpa [#allocation3], 1 }
  0xe2   :  { %384 = vsyncpa [#allocation3 + $0x1], 1 }
  0xe3   :  { %385 = vsyncpa [#allocation6], 1 }
  0xe4   :  { %386 = vsyncpa [#allocation4], 1 }
  0xe5   :  { %388 = vsyncpa [#allocation4 + $0x1], 1 }

</bundles_post_ra>
